<compile_context>
chip_gen: v7x
topology: tpu7x:2x2x1
jax: 0.10.0
libtpu: 0.0.40
codegen_flags: <defaults>
</compile_context>

<pallas_src>
import jax
import jax.numpy as jnp
from jax.experimental import pallas as pl
from jax.experimental.pallas import tpu as pltpu

_LN_EPS = 1e-5


def _round_up(x, m):
    return (x + m - 1) // m * m


def _layer_norm_1pass(x, gamma, beta):
    """LayerNorm over the last axis (torch semantics, biased var, eps=1e-5)."""
    inv_c = 1.0 / x.shape[-1]
    s1 = jnp.sum(x, axis=-1, keepdims=True)
    s2 = jnp.sum(x * x, axis=-1, keepdims=True)
    mean = s1 * inv_c
    var = jnp.maximum(s2 * inv_c - mean * mean, 0.0)
    return (x - mean) * jax.lax.rsqrt(var + _LN_EPS) * gamma + beta


def _make_fused_kernel(T, tT, compute_dtype):
    """Fused conv->relu->LN->conv->relu->LN->linear kernel (kernel_size=3)."""

    def kernel(x_ref, w1_ref, b1_ref, g1_ref, be1_ref,
               w2_ref, b2_ref, g2_ref, be2_ref, wl_ref, bl_ref, o_ref):
        j = pl.program_id(1)
        # Base offset of this time tile in the padded input (multiple of tT).
        base = pl.multiple_of(j * tT, 8)

        # One 8-aligned dynamic load of the haloed window, then cheap static
        # per-tap slices (avoids unaligned dynamic sublane offsets).
        x_strip = x_ref[0, pl.ds(base, tT + 8), :]           # (tT+8, Cin_pad)

        # ---- layer 1: Conv1d(k=3,'same') -> ReLU -> LayerNorm -------------
        # Produce tT+2 rows (one halo row per side for layer 2's conv).
        n1 = tT + 2
        c1 = w1_ref.shape[2]
        acc1 = jnp.zeros((n1, c1), jnp.float32)
        for k in range(3):                                   # static taps
            acc1 = acc1 + jnp.dot(x_strip[k:k + n1, :], w1_ref[k],
                                  preferred_element_type=jnp.float32)
        acc1 = jnp.maximum(acc1 + b1_ref[...], 0.0)
        h1 = _layer_norm_1pass(acc1, g1_ref[...], be1_ref[...])

        # h1 row r is global time s = j*tT - 1 + r.  Torch zero-pads
        # layer-1's *output* outside [0, T) before layer 2's conv, so zero
        # those rows (they are nonzero here after bias/ReLU/LN).
        r = jax.lax.broadcasted_iota(jnp.int32, (n1, 1), 0)
        s = j * tT - 1 + r
        valid = jnp.logical_and(s >= 0, s < T)
        h1 = jnp.where(valid, h1, 0.0).astype(compute_dtype)

        # ---- layer 2: Conv1d(k=3,'same') -> ReLU -> LayerNorm -------------
        c2 = w2_ref.shape[2]
        acc2 = jnp.zeros((tT, c2), jnp.float32)
        for k in range(3):
            acc2 = acc2 + jnp.dot(h1[k:k + tT, :], w2_ref[k],
                                  preferred_element_type=jnp.float32)
        acc2 = jnp.maximum(acc2 + b2_ref[...], 0.0)
        y2 = _layer_norm_1pass(acc2, g2_ref[...], be2_ref[...])

        # TODO(synk): Dropout(0.5) omitted -- inference / eval mode (identity).

        # ---- final Linear(n_chans, 1) -------------------------------------
        proj = jnp.dot(y2, wl_ref[...], preferred_element_type=jnp.float32)
        o_ref[0] = (proj + bl_ref[...]).astype(o_ref.dtype)

    return kernel


def prepare_params(raw_params, compute_dtype=jnp.bfloat16):
    """One-time layout/dtype prep of torch-layout params (hoisted off the fwd path)."""
    conv = raw_params["conv"]
    assert len(conv) == 2, "fused kernel supports n_layers == 2 (module default)"
    idim = conv[0][0].shape[1]
    cin_pad = int(_round_up(idim, 128))                       # MXU/lane alignment

    layers = []
    for li, (w_oik, b, g, be) in enumerate(conv):
        cout, cin, ksize = w_oik.shape
        assert ksize == 3, "fused kernel supports kernel_size == 3 (module default)"
        w_kio = jnp.transpose(w_oik, (2, 1, 0))               # (K, Cin, Cout)
        if li == 0:
            w_kio = jnp.pad(w_kio, ((0, 0), (0, cin_pad - cin), (0, 0)))
        layers.append((w_kio.astype(compute_dtype),
                       b.reshape(1, cout).astype(jnp.float32),
                       g.reshape(1, cout).astype(jnp.float32),
                       be.reshape(1, cout).astype(jnp.float32)))

    wl = raw_params["linear_w"].reshape(-1, 1).astype(jnp.float32)   # (C, 1)
    bl = raw_params["linear_b"].reshape(1, 1).astype(jnp.float32)
    return {"layers": layers, "linear_w": wl, "linear_b": bl,
            "idim": int(idim), "cin_pad": cin_pad, "compute_dtype": compute_dtype}


def variance_predictor_forward(xs, params, x_masks=None, *, tile_t=256):
    """xs: (B, T, idim) float32; x_masks: optional bool (B, T, 1). -> (B, T, 1)."""
    B, T, idim = xs.shape
    assert idim == params["idim"]
    assert tile_t % 8 == 0
    compute_dtype = params["compute_dtype"]
    cin_pad = params["cin_pad"]
    (w1, b1, g1, be1), (w2, b2, g2, be2) = params["layers"]
    wl, bl = params["linear_w"], params["linear_b"]

    tT = min(tile_t, _round_up(T, 8))
    t_pad = _round_up(T, tT)
    n_t = t_pad // tT

    # Single pad of the narrow input: 2 halo rows on the left, enough zero
    # rows on the right for the last tile's halo + aligned strip load, and
    # channel padding up to a lane multiple.
    xp = jnp.pad(xs, ((0, 0), (2, t_pad - T + 6), (0, cin_pad - idim)))
    xp = xp.astype(compute_dtype)
    tp_total = t_pad + 8

    kernel = _make_fused_kernel(T, tT, compute_dtype)
    out = pl.pallas_call(
        kernel,
        out_shape=jax.ShapeDtypeStruct((B, t_pad, 1), xs.dtype),
        grid=(B, n_t),
        in_specs=[
            pl.BlockSpec((1, tp_total, cin_pad), lambda b, j: (b, 0, 0)),
            pl.BlockSpec(w1.shape, lambda b, j: (0, 0, 0)),
            pl.BlockSpec(b1.shape, lambda b, j: (0, 0)),
            pl.BlockSpec(g1.shape, lambda b, j: (0, 0)),
            pl.BlockSpec(be1.shape, lambda b, j: (0, 0)),
            pl.BlockSpec(w2.shape, lambda b, j: (0, 0, 0)),
            pl.BlockSpec(b2.shape, lambda b, j: (0, 0)),
            pl.BlockSpec(g2.shape, lambda b, j: (0, 0)),
            pl.BlockSpec(be2.shape, lambda b, j: (0, 0)),
            pl.BlockSpec(wl.shape, lambda b, j: (0, 0)),
            pl.BlockSpec(bl.shape, lambda b, j: (0, 0)),
        ],
        out_specs=pl.BlockSpec((1, tT, 1), lambda b, j: (b, j, 0)),
        compiler_params=pltpu.CompilerParams(
            dimension_semantics=("parallel", "parallel"),
            vmem_limit_bytes=32 * 1024 * 1024),
    )(xp, w1, b1, g1, be1, w2, b2, g2, be2, wl, bl)

    out = out[:, :T, :]
    if x_masks is not None:
        out = jnp.where(x_masks, jnp.zeros_like(out), out)
    return out


# ---------------- reference (pure JAX, torch semantics) + param init --------
def make_params(key, idim, n_layers=2, n_chans=384, kernel_size=3):
    keys = jax.random.split(key, 4 * n_layers + 2)
    conv = []
    for idx in range(n_layers):
        in_chans = idim if idx == 0 else n_chans
        w = 0.1 * jax.random.normal(keys[4 * idx], (n_chans, in_chans, kernel_size), jnp.float32)
        b = 0.1 * jax.random.normal(keys[4 * idx + 1], (n_chans,), jnp.float32)
        g = 1.0 + 0.1 * jax.random.normal(keys[4 * idx + 2], (n_chans,), jnp.float32)
        be = 0.1 * jax.random.normal(keys[4 * idx + 3], (n_chans,), jnp.float32)
        conv.append((w, b, g, be))
    lw = 0.1 * jax.random.normal(keys[-2], (1, n_chans), jnp.float32)
    lb = 0.1 * jax.random.normal(keys[-1], (1,), jnp.float32)
    return {"conv": conv, "linear_w": lw, "linear_b": lb}


def reference_forward(xs, raw_params, x_masks=None):
    prec = jax.lax.Precision.HIGHEST
    h = xs
    for (w_oik, b, g, be) in raw_params["conv"]:
        K = w_oik.shape[-1]
        pad = (K - 1) // 2
        T = h.shape[1]
        hpad = jnp.pad(h, ((0, 0), (pad, pad), (0, 0)))
        w_kio = jnp.transpose(w_oik, (2, 1, 0))
        acc = jnp.zeros(h.shape[:2] + (w_oik.shape[0],), jnp.float32) + b
        for k in range(K):
            acc = acc + jnp.einsum('btc,cd->btd', hpad[:, k:k + T, :], w_kio[k], precision=prec)
        acc = jnp.maximum(acc, 0.0)
        mean = jnp.mean(acc, axis=-1, keepdims=True)
        var = jnp.mean(jnp.square(acc - mean), axis=-1, keepdims=True)
        h = (acc - mean) / jnp.sqrt(var + _LN_EPS) * g + be
    out = jnp.einsum('btc,oc->bto', h, raw_params["linear_w"], precision=prec) \
        + raw_params["linear_b"]
    if x_masks is not None:
        out = jnp.where(x_masks, jnp.zeros_like(out), out)
    return out


if __name__ == "__main__":
    # Small shapes consistent with the module: batch=2, seq=40, idim=32,
    # n_chans=128 (lane-aligned), kernel_size=3, n_layers=2.
    B, T, IDIM, NCHANS = 2, 40, 32, 128

    key = jax.random.PRNGKey(0)
    k_x, k_p, k_m = jax.random.split(key, 3)
    xs = jax.random.normal(k_x, (B, T, IDIM), jnp.float32)
    raw = make_params(k_p, IDIM, n_layers=2, n_chans=NCHANS, kernel_size=3)
    x_masks = jax.random.bernoulli(k_m, 0.3, (B, T, 1))

    ref = reference_forward(xs, raw)
    ref_masked = reference_forward(xs, raw, x_masks=x_masks)

    # f32-operand path, tile_t=16 -> 3 time tiles: exercises cross-tile halos
    # and the sequence-edge masking against the pure-JAX reference.
    params_f32 = prepare_params(raw, compute_dtype=jnp.float32)
    out_f32 = jax.block_until_ready(variance_predictor_forward(xs, params_f32, tile_t=16))
    assert out_f32.shape == (B, T, 1), out_f32.shape
    assert float(jnp.max(jnp.abs(out_f32 - ref))) < 2e-3

    # Default bf16-operand path (f32 accumulation), masked_fill semantics.
    params_bf16 = prepare_params(raw, compute_dtype=jnp.bfloat16)
    out_bf16 = jax.block_until_ready(
        variance_predictor_forward(xs, params_bf16, x_masks=x_masks, tile_t=16))
    assert out_bf16.shape == (B, T, 1), out_bf16.shape
    assert float(jnp.max(jnp.abs(out_bf16 - ref_masked))) < 0.3

    # Also run with the default (256-row) time tile once.
    out_default = jax.block_until_ready(variance_predictor_forward(xs, params_bf16))
    assert out_default.shape == (B, T, 1)

    print("KERNEL_OK")
</pallas_src>

<mosaic_0001>
module attributes {stable_mosaic.version = 11 : i64} {
  func.func @kernel(%arg0: i32, %arg1: i32, %arg2: memref<1x56x128xf32, #tpu.memory_space<vmem>>, %arg3: memref<3x128x128xf32, #tpu.memory_space<vmem>>, %arg4: memref<1x128xf32, #tpu.memory_space<vmem>>, %arg5: memref<1x128xf32, #tpu.memory_space<vmem>>, %arg6: memref<1x128xf32, #tpu.memory_space<vmem>>, %arg7: memref<3x128x128xf32, #tpu.memory_space<vmem>>, %arg8: memref<1x128xf32, #tpu.memory_space<vmem>>, %arg9: memref<1x128xf32, #tpu.memory_space<vmem>>, %arg10: memref<1x128xf32, #tpu.memory_space<vmem>>, %arg11: memref<128x1xf32, #tpu.memory_space<vmem>>, %arg12: memref<1x1xf32, #tpu.memory_space<vmem>>, %arg13: memref<1x16x1xf32, #tpu.memory_space<vmem>>) attributes {dimension_semantics = [#tpu.dimension_semantics<parallel>, #tpu.dimension_semantics<parallel>], iteration_bounds = array<i64: 2, 3>, scalar_prefetch = 0 : i64, scratch_operands = 0 : i64, tpu.core_type = #tpu.core_type<tc>, window_params = [{transform_indices = @transform_0, window_bounds = array<i64: 1, 56, 128>}, {pipeline_mode = #tpu.pipeline_mode<synchronous>, transform_indices = @transform_1, window_bounds = array<i64: 3, 128, 128>}, {pipeline_mode = #tpu.pipeline_mode<synchronous>, transform_indices = @transform_2, window_bounds = array<i64: 1, 128>}, {pipeline_mode = #tpu.pipeline_mode<synchronous>, transform_indices = @transform_3, window_bounds = array<i64: 1, 128>}, {pipeline_mode = #tpu.pipeline_mode<synchronous>, transform_indices = @transform_4, window_bounds = array<i64: 1, 128>}, {pipeline_mode = #tpu.pipeline_mode<synchronous>, transform_indices = @transform_5, window_bounds = array<i64: 3, 128, 128>}, {pipeline_mode = #tpu.pipeline_mode<synchronous>, transform_indices = @transform_6, window_bounds = array<i64: 1, 128>}, {pipeline_mode = #tpu.pipeline_mode<synchronous>, transform_indices = @transform_7, window_bounds = array<i64: 1, 128>}, {pipeline_mode = #tpu.pipeline_mode<synchronous>, transform_indices = @transform_8, window_bounds = array<i64: 1, 128>}, {pipeline_mode = #tpu.pipeline_mode<synchronous>, transform_indices = @transform_9, window_bounds = array<i64: 128, 1>}, {pipeline_mode = #tpu.pipeline_mode<synchronous>, transform_indices = @transform_10, window_bounds = array<i64: 1, 1>}, {transform_indices = @transform_11, window_bounds = array<i64: 1, 16, 1>}]} {
    %c16_i32 = arith.constant 16 : i32
    %0 = arith.muli %arg1, %c16_i32 : i32
    %1 = tpu.assume_multiple %0, 8 : i32
    %c0 = arith.constant 0 : index
    %2 = arith.index_cast %1 : i32 to index
    %c0_0 = arith.constant 0 : index
    %3 = vector.load %arg2[%c0, %2, %c0_0] : memref<1x56x128xf32, #tpu.memory_space<vmem>>, vector<1x24x128xf32>
    %4 = vector.shape_cast %3 : vector<1x24x128xf32> to vector<24x128xf32>
    %cst = arith.constant 0.000000e+00 : f32
    %5 = vector.broadcast %cst : f32 to vector<18x128xf32>
    %6 = vector.extract_strided_slice %4 {offsets = [0, 0], sizes = [18, 128], strides = [1, 1]} : vector<24x128xf32> to vector<18x128xf32>
    %c0_1 = arith.constant 0 : index
    %c0_2 = arith.constant 0 : index
    %c0_3 = arith.constant 0 : index
    %7 = vector.load %arg3[%c0_1, %c0_2, %c0_3] : memref<3x128x128xf32, #tpu.memory_space<vmem>>, vector<1x128x128xf32>
    %8 = vector.shape_cast %7 : vector<1x128x128xf32> to vector<128x128xf32>
    %cst_4 = arith.constant dense<0.000000e+00> : vector<18x128xf32>
    %9 = tpu.matmul %6, %8, %cst_4 {dimension_numbers = #tpu.dot_dimension_numbers<[1], [0], [0], [1], [0, 0, 1, 1], [], []>} : vector<18x128xf32>, vector<128x128xf32>, vector<18x128xf32> -> vector<18x128xf32>
    %10 = arith.addf %5, %9 : vector<18x128xf32>
    %11 = vector.extract_strided_slice %4 {offsets = [1, 0], sizes = [18, 128], strides = [1, 1]} : vector<24x128xf32> to vector<18x128xf32>
    %c1 = arith.constant 1 : index
    %c0_5 = arith.constant 0 : index
    %c0_6 = arith.constant 0 : index
    %12 = vector.load %arg3[%c1, %c0_5, %c0_6] : memref<3x128x128xf32, #tpu.memory_space<vmem>>, vector<1x128x128xf32>
    %13 = vector.shape_cast %12 : vector<1x128x128xf32> to vector<128x128xf32>
    %cst_7 = arith.constant dense<0.000000e+00> : vector<18x128xf32>
    %14 = tpu.matmul %11, %13, %cst_7 {dimension_numbers = #tpu.dot_dimension_numbers<[1], [0], [0], [1], [0, 0, 1, 1], [], []>} : vector<18x128xf32>, vector<128x128xf32>, vector<18x128xf32> -> vector<18x128xf32>
    %15 = arith.addf %10, %14 : vector<18x128xf32>
    %16 = vector.extract_strided_slice %4 {offsets = [2, 0], sizes = [18, 128], strides = [1, 1]} : vector<24x128xf32> to vector<18x128xf32>
    %c2 = arith.constant 2 : index
    %c0_8 = arith.constant 0 : index
    %c0_9 = arith.constant 0 : index
    %17 = vector.load %arg3[%c2, %c0_8, %c0_9] : memref<3x128x128xf32, #tpu.memory_space<vmem>>, vector<1x128x128xf32>
    %18 = vector.shape_cast %17 : vector<1x128x128xf32> to vector<128x128xf32>
    %cst_10 = arith.constant dense<0.000000e+00> : vector<18x128xf32>
    %19 = tpu.matmul %16, %18, %cst_10 {dimension_numbers = #tpu.dot_dimension_numbers<[1], [0], [0], [1], [0, 0, 1, 1], [], []>} : vector<18x128xf32>, vector<128x128xf32>, vector<18x128xf32> -> vector<18x128xf32>
    %20 = arith.addf %15, %19 : vector<18x128xf32>
    %c0_11 = arith.constant 0 : index
    %c0_12 = arith.constant 0 : index
    %21 = vector.load %arg4[%c0_11, %c0_12] : memref<1x128xf32, #tpu.memory_space<vmem>>, vector<1x128xf32>
    %22 = vector.broadcast %21 : vector<1x128xf32> to vector<18x128xf32>
    %23 = arith.addf %20, %22 : vector<18x128xf32>
    %cst_13 = arith.constant 0.000000e+00 : f32
    %24 = vector.broadcast %cst_13 : f32 to vector<18x128xf32>
    %25 = arith.maximumf %23, %24 : vector<18x128xf32>
    %c0_14 = arith.constant 0 : index
    %c0_15 = arith.constant 0 : index
    %26 = vector.load %arg5[%c0_14, %c0_15] : memref<1x128xf32, #tpu.memory_space<vmem>>, vector<1x128xf32>
    %c0_16 = arith.constant 0 : index
    %c0_17 = arith.constant 0 : index
    %27 = vector.load %arg6[%c0_16, %c0_17] : memref<1x128xf32, #tpu.memory_space<vmem>>, vector<1x128xf32>
    %cst_18 = arith.constant dense<0.000000e+00> : vector<18xf32>
    %28 = vector.multi_reduction <add>, %25, %cst_18 [1] : vector<18x128xf32> to vector<18xf32>
    %29 = vector.shape_cast %28 : vector<18xf32> to vector<18x1xf32>
    %30 = arith.mulf %25, %25 : vector<18x128xf32>
    %cst_19 = arith.constant dense<0.000000e+00> : vector<18xf32>
    %31 = vector.multi_reduction <add>, %30, %cst_19 [1] : vector<18x128xf32> to vector<18xf32>
    %32 = vector.shape_cast %31 : vector<18xf32> to vector<18x1xf32>
    %cst_20 = arith.constant 7.812500e-03 : f32
    %33 = vector.broadcast %cst_20 : f32 to vector<18x1xf32>
    %34 = arith.mulf %29, %33 : vector<18x1xf32>
    %cst_21 = arith.constant 7.812500e-03 : f32
    %35 = vector.broadcast %cst_21 : f32 to vector<18x1xf32>
    %36 = arith.mulf %32, %35 : vector<18x1xf32>
    %37 = arith.mulf %34, %34 : vector<18x1xf32>
    %38 = arith.subf %36, %37 : vector<18x1xf32>
    %cst_22 = arith.constant 0.000000e+00 : f32
    %39 = vector.broadcast %cst_22 : f32 to vector<18x1xf32>
    %40 = arith.maximumf %38, %39 : vector<18x1xf32>
    %41 = vector.broadcast %34 : vector<18x1xf32> to vector<18x128xf32>
    %42 = arith.subf %25, %41 : vector<18x128xf32>
    %cst_23 = arith.constant 9.99999974E-6 : f32
    %43 = vector.broadcast %cst_23 : f32 to vector<18x1xf32>
    %44 = arith.addf %40, %43 : vector<18x1xf32>
    %45 = math.rsqrt %44 : vector<18x1xf32>
    %46 = vector.broadcast %45 : vector<18x1xf32> to vector<18x128xf32>
    %47 = arith.mulf %42, %46 : vector<18x128xf32>
    %48 = vector.broadcast %26 : vector<1x128xf32> to vector<18x128xf32>
    %49 = arith.mulf %47, %48 : vector<18x128xf32>
    %50 = vector.broadcast %27 : vector<1x128xf32> to vector<18x128xf32>
    %51 = arith.addf %49, %50 : vector<18x128xf32>
    %52 = tpu.iota {dimensions = array<i32: 0>} : vector<18x1xi32>
    %c16_i32_24 = arith.constant 16 : i32
    %53 = arith.muli %arg1, %c16_i32_24 : i32
    %c1_i32 = arith.constant 1 : i32
    %54 = arith.subi %53, %c1_i32 : i32
    %55 = vector.broadcast %54 : i32 to vector<18x1xi32>
    %56 = arith.addi %55, %52 : vector<18x1xi32>
    %c0_i32 = arith.constant 0 : i32
    %57 = vector.broadcast %c0_i32 : i32 to vector<18x1xi32>
    %58 = arith.cmpi sge, %56, %57 : vector<18x1xi32>
    %c40_i32 = arith.constant 40 : i32
    %59 = vector.broadcast %c40_i32 : i32 to vector<18x1xi32>
    %60 = arith.cmpi slt, %56, %59 : vector<18x1xi32>
    %61 = arith.andi %58, %60 : vector<18x1xi1>
    %cst_25 = arith.constant 0.000000e+00 : f32
    %62 = vector.shape_cast %61 : vector<18x1xi1> to vector<18x1xi1>
    %63 = vector.broadcast %62 : vector<18x1xi1> to vector<18x128xi1>
    %64 = vector.broadcast %cst_25 : f32 to vector<18x128xf32>
    %65 = arith.select %63, %51, %64 : vector<18x128xi1>, vector<18x128xf32>
    %cst_26 = arith.constant 0.000000e+00 : f32
    %66 = vector.broadcast %cst_26 : f32 to vector<16x128xf32>
    %67 = vector.extract_strided_slice %65 {offsets = [0, 0], sizes = [16, 128], strides = [1, 1]} : vector<18x128xf32> to vector<16x128xf32>
    %c0_27 = arith.constant 0 : index
    %c0_28 = arith.constant 0 : index
    %c0_29 = arith.constant 0 : index
    %68 = vector.load %arg7[%c0_27, %c0_28, %c0_29] : memref<3x128x128xf32, #tpu.memory_space<vmem>>, vector<1x128x128xf32>
    %69 = vector.shape_cast %68 : vector<1x128x128xf32> to vector<128x128xf32>
    %cst_30 = arith.constant dense<0.000000e+00> : vector<16x128xf32>
    %70 = tpu.matmul %67, %69, %cst_30 {dimension_numbers = #tpu.dot_dimension_numbers<[1], [0], [0], [1], [0, 0, 1, 1], [], []>} : vector<16x128xf32>, vector<128x128xf32>, vector<16x128xf32> -> vector<16x128xf32>
    %71 = arith.addf %66, %70 : vector<16x128xf32>
    %72 = vector.extract_strided_slice %65 {offsets = [1, 0], sizes = [16, 128], strides = [1, 1]} : vector<18x128xf32> to vector<16x128xf32>
    %c1_31 = arith.constant 1 : index
    %c0_32 = arith.constant 0 : index
    %c0_33 = arith.constant 0 : index
    %73 = vector.load %arg7[%c1_31, %c0_32, %c0_33] : memref<3x128x128xf32, #tpu.memory_space<vmem>>, vector<1x128x128xf32>
    %74 = vector.shape_cast %73 : vector<1x128x128xf32> to vector<128x128xf32>
    %cst_34 = arith.constant dense<0.000000e+00> : vector<16x128xf32>
    %75 = tpu.matmul %72, %74, %cst_34 {dimension_numbers = #tpu.dot_dimension_numbers<[1], [0], [0], [1], [0, 0, 1, 1], [], []>} : vector<16x128xf32>, vector<128x128xf32>, vector<16x128xf32> -> vector<16x128xf32>
    %76 = arith.addf %71, %75 : vector<16x128xf32>
    %77 = vector.extract_strided_slice %65 {offsets = [2, 0], sizes = [16, 128], strides = [1, 1]} : vector<18x128xf32> to vector<16x128xf32>
    %c2_35 = arith.constant 2 : index
    %c0_36 = arith.constant 0 : index
    %c0_37 = arith.constant 0 : index
    %78 = vector.load %arg7[%c2_35, %c0_36, %c0_37] : memref<3x128x128xf32, #tpu.memory_space<vmem>>, vector<1x128x128xf32>
    %79 = vector.shape_cast %78 : vector<1x128x128xf32> to vector<128x128xf32>
    %cst_38 = arith.constant dense<0.000000e+00> : vector<16x128xf32>
    %80 = tpu.matmul %77, %79, %cst_38 {dimension_numbers = #tpu.dot_dimension_numbers<[1], [0], [0], [1], [0, 0, 1, 1], [], []>} : vector<16x128xf32>, vector<128x128xf32>, vector<16x128xf32> -> vector<16x128xf32>
    %81 = arith.addf %76, %80 : vector<16x128xf32>
    %c0_39 = arith.constant 0 : index
    %c0_40 = arith.constant 0 : index
    %82 = vector.load %arg8[%c0_39, %c0_40] : memref<1x128xf32, #tpu.memory_space<vmem>>, vector<1x128xf32>
    %83 = vector.broadcast %82 : vector<1x128xf32> to vector<16x128xf32>
    %84 = arith.addf %81, %83 : vector<16x128xf32>
    %cst_41 = arith.constant 0.000000e+00 : f32
    %85 = vector.broadcast %cst_41 : f32 to vector<16x128xf32>
    %86 = arith.maximumf %84, %85 : vector<16x128xf32>
    %c0_42 = arith.constant 0 : index
    %c0_43 = arith.constant 0 : index
    %87 = vector.load %arg9[%c0_42, %c0_43] : memref<1x128xf32, #tpu.memory_space<vmem>>, vector<1x128xf32>
    %c0_44 = arith.constant 0 : index
    %c0_45 = arith.constant 0 : index
    %88 = vector.load %arg10[%c0_44, %c0_45] : memref<1x128xf32, #tpu.memory_space<vmem>>, vector<1x128xf32>
    %cst_46 = arith.constant dense<0.000000e+00> : vector<16xf32>
    %89 = vector.multi_reduction <add>, %86, %cst_46 [1] : vector<16x128xf32> to vector<16xf32>
    %90 = vector.shape_cast %89 : vector<16xf32> to vector<16x1xf32>
    %91 = arith.mulf %86, %86 : vector<16x128xf32>
    %cst_47 = arith.constant dense<0.000000e+00> : vector<16xf32>
    %92 = vector.multi_reduction <add>, %91, %cst_47 [1] : vector<16x128xf32> to vector<16xf32>
    %93 = vector.shape_cast %92 : vector<16xf32> to vector<16x1xf32>
    %cst_48 = arith.constant 7.812500e-03 : f32
    %94 = vector.broadcast %cst_48 : f32 to vector<16x1xf32>
    %95 = arith.mulf %90, %94 : vector<16x1xf32>
    %cst_49 = arith.constant 7.812500e-03 : f32
    %96 = vector.broadcast %cst_49 : f32 to vector<16x1xf32>
    %97 = arith.mulf %93, %96 : vector<16x1xf32>
    %98 = arith.mulf %95, %95 : vector<16x1xf32>
    %99 = arith.subf %97, %98 : vector<16x1xf32>
    %cst_50 = arith.constant 0.000000e+00 : f32
    %100 = vector.broadcast %cst_50 : f32 to vector<16x1xf32>
    %101 = arith.maximumf %99, %100 : vector<16x1xf32>
    %102 = vector.broadcast %95 : vector<16x1xf32> to vector<16x128xf32>
    %103 = arith.subf %86, %102 : vector<16x128xf32>
    %cst_51 = arith.constant 9.99999974E-6 : f32
    %104 = vector.broadcast %cst_51 : f32 to vector<16x1xf32>
    %105 = arith.addf %101, %104 : vector<16x1xf32>
    %106 = math.rsqrt %105 : vector<16x1xf32>
    %107 = vector.broadcast %106 : vector<16x1xf32> to vector<16x128xf32>
    %108 = arith.mulf %103, %107 : vector<16x128xf32>
    %109 = vector.broadcast %87 : vector<1x128xf32> to vector<16x128xf32>
    %110 = arith.mulf %108, %109 : vector<16x128xf32>
    %111 = vector.broadcast %88 : vector<1x128xf32> to vector<16x128xf32>
    %112 = arith.addf %110, %111 : vector<16x128xf32>
    %c0_52 = arith.constant 0 : index
    %c0_53 = arith.constant 0 : index
    %113 = vector.load %arg11[%c0_52, %c0_53] : memref<128x1xf32, #tpu.memory_space<vmem>>, vector<128x1xf32>
    %cst_54 = arith.constant dense<0.000000e+00> : vector<16x1xf32>
    %114 = tpu.matmul %112, %113, %cst_54 {dimension_numbers = #tpu.dot_dimension_numbers<[1], [0], [0], [1], [0, 0, 1, 1], [], []>} : vector<16x128xf32>, vector<128x1xf32>, vector<16x1xf32> -> vector<16x1xf32>
    %c0_55 = arith.constant 0 : index
    %c0_56 = arith.constant 0 : index
    %115 = vector.load %arg12[%c0_55, %c0_56] : memref<1x1xf32, #tpu.memory_space<vmem>>, vector<1x1xf32>
    %116 = vector.broadcast %115 : vector<1x1xf32> to vector<16x1xf32>
    %117 = arith.addf %114, %116 : vector<16x1xf32>
    %c0_57 = arith.constant 0 : index
    %c0_58 = arith.constant 0 : index
    %c0_59 = arith.constant 0 : index
    %118 = vector.load %arg13[%c0_57, %c0_58, %c0_59] : memref<1x16x1xf32, #tpu.memory_space<vmem>>, vector<1x16x1xf32>
    %119 = vector.shape_cast %118 : vector<1x16x1xf32> to vector<16x1xf32>
    %120 = vector.shape_cast %117 : vector<16x1xf32> to vector<1x16x1xf32>
    tpu.vector_store %arg13[%c0_57, %c0_58, %c0_59], %120 {strides = array<i32>} : memref<1x16x1xf32, #tpu.memory_space<vmem>>, vector<1x16x1xf32>,
    return
  }
  func.func @transform_0(%arg0: i32, %arg1: i32) -> (i32, i32, i32) {
    %c0_i32 = arith.constant 0 : i32
    %c0_i32_0 = arith.constant 0 : i32
    %c0_i32_1 = arith.constant 0 : i32
    return %arg0, %c0_i32, %c0_i32_0 : i32, i32, i32
  }
  func.func @transform_1(%arg0: i32, %arg1: i32) -> (i32, i32, i32) {
    %c0_i32 = arith.constant 0 : i32
    %c0_i32_0 = arith.constant 0 : i32
    %c0_i32_1 = arith.constant 0 : i32
    %c0_i32_2 = arith.constant 0 : i32
    return %c0_i32, %c0_i32_0, %c0_i32_1 : i32, i32, i32
  }
  func.func @transform_2(%arg0: i32, %arg1: i32) -> (i32, i32) {
    %c0_i32 = arith.constant 0 : i32
    %c0_i32_0 = arith.constant 0 : i32
    %c0_i32_1 = arith.constant 0 : i32
    return %c0_i32, %c0_i32_0 : i32, i32
  }
  func.func @transform_3(%arg0: i32, %arg1: i32) -> (i32, i32) {
    %c0_i32 = arith.constant 0 : i32
    %c0_i32_0 = arith.constant 0 : i32
    %c0_i32_1 = arith.constant 0 : i32
    return %c0_i32, %c0_i32_0 : i32, i32
  }
  func.func @transform_4(%arg0: i32, %arg1: i32) -> (i32, i32) {
    %c0_i32 = arith.constant 0 : i32
    %c0_i32_0 = arith.constant 0 : i32
    %c0_i32_1 = arith.constant 0 : i32
    return %c0_i32, %c0_i32_0 : i32, i32
  }
  func.func @transform_5(%arg0: i32, %arg1: i32) -> (i32, i32, i32) {
    %c0_i32 = arith.constant 0 : i32
    %c0_i32_0 = arith.constant 0 : i32
    %c0_i32_1 = arith.constant 0 : i32
    %c0_i32_2 = arith.constant 0 : i32
    return %c0_i32, %c0_i32_0, %c0_i32_1 : i32, i32, i32
  }
  func.func @transform_6(%arg0: i32, %arg1: i32) -> (i32, i32) {
    %c0_i32 = arith.constant 0 : i32
    %c0_i32_0 = arith.constant 0 : i32
    %c0_i32_1 = arith.constant 0 : i32
    return %c0_i32, %c0_i32_0 : i32, i32
  }
  func.func @transform_7(%arg0: i32, %arg1: i32) -> (i32, i32) {
    %c0_i32 = arith.constant 0 : i32
    %c0_i32_0 = arith.constant 0 : i32
    %c0_i32_1 = arith.constant 0 : i32
    return %c0_i32, %c0_i32_0 : i32, i32
  }
  func.func @transform_8(%arg0: i32, %arg1: i32) -> (i32, i32) {
    %c0_i32 = arith.constant 0 : i32
    %c0_i32_0 = arith.constant 0 : i32
    %c0_i32_1 = arith.constant 0 : i32
    return %c0_i32, %c0_i32_0 : i32, i32
  }
  func.func @transform_9(%arg0: i32, %arg1: i32) -> (i32, i32) {
    %c0_i32 = arith.constant 0 : i32
    %c0_i32_0 = arith.constant 0 : i32
    %c0_i32_1 = arith.constant 0 : i32
    return %c0_i32, %c0_i32_0 : i32, i32
  }
  func.func @transform_10(%arg0: i32, %arg1: i32) -> (i32, i32) {
    %c0_i32 = arith.constant 0 : i32
    %c0_i32_0 = arith.constant 0 : i32
    %c0_i32_1 = arith.constant 0 : i32
    return %c0_i32, %c0_i32_0 : i32, i32
  }
  func.func @transform_11(%arg0: i32, %arg1: i32) -> (i32, i32, i32) {
    %c0_i32 = arith.constant 0 : i32
    %c0_i32_0 = arith.constant 0 : i32
    return %arg0, %arg1, %c0_i32 : i32, i32, i32
  }
}

</mosaic_0001>

<bundles_post_ra>
// kernel: tpu_custom_call.1
= control target key start
LH: loop header
LB: loop body
LE: loop exit
PB: predicated region body
PF: predicated region fallthrough
CT: control target
= control target key end

     0   :  { %s2631_s0 = inlined_call_operand.vmem [shape: f32[2,56,128], index: 0, kind: input, shape index: {}]   ;;  %s2632_s1 = inlined_call_operand.hbm [shape: f32[3,128,128], index: 1, kind: input, shape index: {}]   ;;  %s2633_s2 = inlined_call_operand.vmem [shape: f32[1,128], index: 2, kind: input, shape index: {}]   ;;  %s2634_s3 = inlined_call_operand.vmem [shape: f32[1,128], index: 3, kind: input, shape index: {}]   ;;  %s2635_s4 = inlined_call_operand.vmem [shape: f32[1,128], index: 4, kind: input, shape index: {}]   ;;  %s2636_s5 = inlined_call_operand.hbm [shape: f32[3,128,128], index: 5, kind: input, shape index: {}]   ;;  %s2637_s6 = inlined_call_operand.vmem [shape: f32[1,128], index: 6, kind: input, shape index: {}]   ;;  %s2638_s7 = inlined_call_operand.vmem [shape: f32[1,128], index: 7, kind: input, shape index: {}]   ;;  %s2639_s8 = inlined_call_operand.vmem [shape: f32[1,128], index: 8, kind: input, shape index: {}]   ;;  %s2640_s9 = inlined_call_operand.vmem [shape: f32[128,1], index: 9, kind: input, shape index: {}]   ;;  %s2641_s10 = inlined_call_operand.<no memory space> [shape: f32[1,1], index: 10, kind: input, shape index: {}]   ;;  %s2642_s11 = inlined_call_operand.vmem [shape: f32[2,48,1], index: 11, kind: output, shape index: {}]  }
   0x1   :  { %v16_v0 = vstv %s2641_s10 }
   0x2   :  { %17 = vst [vmem:[#allocation2] sm:$0x1] %v16_v0 }
   0x3   :  { %18 = vsyncpa [#allocation4], 0 }
   0x4   :  { %19 = vsyncpa [#allocation6], 0  ;;  %s2299_s19 = smov 0   ;;  %s2301_s20 = smov 0  }
   0x5   :  { %s2303_s21 = smov 0   ;;  %s2305_s22 = smov 0  }
   0x6   :  { %s2307_s23 = smov 0  }
   0x7 LB: > { %2648 = sst [smem:[#allocation9_spill]] %s2219_s21  ;;  %s1426_s10 = sadd.s32 4294967295, %s2227_s23   ;;  %s2227_s23 = sphi %s2307_s23, %s25_s23   ;;  %s2223_s22 = sphi %s2305_s22, %s2664_s22   ;;  %s2219_s21 = sphi %s2303_s21, %s2663_s21   ;;  %s2215_s20 = sphi %s2301_s20, %s2662_s20   ;;  %s2211_s19 = sphi %s2299_s19, %s2661_s19  }
   0x8   : > { %2649 = sst [smem:[#allocation10_spill]] %s2223_s22  ;;  %s34_s24 = sadd.s32 1, %s2219_s21 }
   0x9   : > { %p35_p0 = scmp.ge.s32.totalorder %s34_s24, 3  ;;  %s37_s25 = sadd.s32 1, %s2223_s22 }
   0xa   : > { %p1428_p1 = scmp.ge.s32.totalorder %s2227_s23, 1  ;;  %p306_p2 = scmp.lt.s32.totalorder %s2227_s23, 7 }
   0xb   : > { %s2666_s24 = smov (%p35_p0, %s34_s24), 0  ;;  %s2668_s25 = smov (!%p35_p0, %s37_s25), %s2223_s22 }
   0xc   : > { %2650 = sst [smem:[#allocation11_spill]] %s2666_s24  ;;  %p2332_p3 = pnand %p1428_p1, %p306_p2 }
   0xd   : > { %p39_p4 = scmp.ge.s32.totalorder %s2668_s25, 2  ;;  %p2336_p5 = scmp.eq.s32.totalorder %s1426_s10, 0 }
   0xe   : > { %s2651_s26 = scalar_select %p2332_p3, 1, 0 }
   0xf   : > { %s2652_s27 = scalar_select %p2336_p5, 1, 0 }
  0x10   : > { %p2057_p6 = pneg %p2332_p3  ;;  %s2670_s25 = smov (%p39_p4, %s2668_s25), 0 }
  0x11   : > { %2653 = sst [smem:[#allocation12_spill]] %s2670_s25  ;;  %s2229_s28 = smov [#allocation3]  }
  0x12   : > { %s318_s29 = sshll.u32 %s2229_s28, 4  ;;  %p2346_p7 = pnand %p2336_p5, %p2057_p6  ;;  %s319_s29 = int_to_ptr.vmem [resolvable:$true] %s318_s29 }
  0x13   : > { %s2125_s14 = scalar_lea.hbm %s2632_s1, 6144 }
  0x14   : > { %p2126_p8 = scmp.ne.s32.totalorder %s2632_s1, %s2125_s14  ;;  %p2127_p9 = pneg %p2346_p7 }
  0x15   : > { %p2132_p12 = scmp.lt.u32.totalorder %s2125_s14, %s2632_s1 }
  0x16   : > { %p2128_p10 = pnand %p2127_p9, %p2126_p8 }
  0x18   : > { %p2129_p11 = pneg %p2128_p10 }
  0x1a   : > { %p2134_p13 = pnand %p2132_p12, %p2129_p11 }
  0x1c   : > { %2137 = shalt.err (!%p2134_p13)
}
  0x1d   : > { %s2138_s10 = scalar_lea.vmem %s319_s29, 6144  ;;  %p2146_p4 = scmp.lt.s32.totalorder %s319_s29, %s319_s29 }
  0x1e   : > { %p2139_p0 = scmp.ne.s32.totalorder %s319_s29, %s2138_s10  ;;  %p2147_p6 = scmp.lt.s32.totalorder %s2138_s10, %s2138_s10 }
  0x20   : > { %p2141_p1 = pnand %p2139_p0, %p2127_p9  ;;  %p2148_p5 = por %p2147_p6, %p2146_p4 }
  0x22   : > { %p2142_p2 = pneg %p2141_p1 }
  0x24   : > { %p2149_p3 = pnand %p2148_p5, %p2142_p2 }
  0x26   : > { %2152 = shalt.err (!%p2149_p3)
}
  0x27   : > { %s2230_s28 = smov 128   ;;  %s2231_s12 = smov 8  }
  0x28   : > { %2060 = dma.hbm_to_vmem [thread:$0]  (!%p2346_p7), %s2632_s1, 6144, %s319_s29, [#allocation4], %s2230_s28, %s2230_s28, %s2231_s12  }
  0x29   : > { %s2232_s15 = smov [#allocation5]   ;;  %s2153_s25 = scalar_lea.hbm %s2636_s5, 6144 }
  0x2a   : > { %s340_s16 = sshll.u32 %s2232_s15, 4  ;;  %p2154_p3 = scmp.ne.s32.totalorder %s2636_s5, %s2153_s25  ;;  %s341_s16 = int_to_ptr.vmem [resolvable:$true] %s340_s16 }
  0x2b   : > { %p2160_p10 = scmp.lt.u32.totalorder %s2153_s25, %s2636_s5 }
  0x2c   : > { %p2156_p5 = pnand %p2154_p3, %p2127_p9 }
  0x2e   : > { %p2157_p8 = pneg %p2156_p5 }
  0x30   : > { %p2162_p11 = pnand %p2160_p10, %p2157_p8 }
  0x32   : > { %2165 = shalt.err (!%p2162_p11)
}
  0x33   : > { %s2166_s29 = scalar_lea.vmem %s341_s16, 6144  ;;  %p2174_p1 = scmp.lt.s32.totalorder %s341_s16, %s341_s16 }
  0x34   : > { %p2167_p12 = scmp.ne.s32.totalorder %s341_s16, %s2166_s29  ;;  %p2175_p2 = scmp.lt.s32.totalorder %s2166_s29, %s2166_s29 }
  0x36   : > { %p2169_p13 = pnand %p2167_p12, %p2127_p9  ;;  %p2176_p4 = por %p2175_p2, %p2174_p1 }
  0x38   : > { %p2170_p0 = pneg %p2169_p13 }
  0x3a   : > { %p2177_p6 = pnand %p2176_p4, %p2170_p0 }
  0x3c   : > { %2180 = shalt.err (!%p2177_p6)
}
  0x3d   : > { %2063 = dma.hbm_to_vmem [thread:$0]  (!%p2346_p7), %s2636_s5, 6144, %s341_s16, [#allocation6], %s2230_s28, %s2230_s28, %s2231_s12  }
  0x3e   : > { %p2655_p3 = scmp.ne.s32.totalorder %s2651_s26, 0 }
  0x3f   : > { %p2656_p5 = scmp.ne.s32.totalorder (!%p2655_p3), %s2652_s27, 0 }
  0x40   : > { %379 = sbr.rel (%p2655_p3) target bundleno = 1212 (0x4bc), region = 64 }
  0x47   : > { %2202 = dma.done.wait (%p2656_p5), [#allocation4], 6144  }
  0x48   : > { %2204 = vsyncadd (%p2656_p5), [#allocation4], 4294961152 }
  0x49   : > { %2206 = dma.done.wait (%p2656_p5), [#allocation6], 6144  }
  0x4a   : > { %2208 = vsyncadd (%p2656_p5), [#allocation6], 4294961152  ;;  %v2233_v1 = vmov 0.0|0.0   ;;  %vm2234_vm0 = vmmov 0   ;;  %v2235_v2 = vmov 0.0   ;;  %v464_v3 = vld [vmem:[#allocation3 + $0x80] sm:$0xff] }
  0x4b   : > { %1843 = vmatprep.subr.bf16.mxu0 %v2233_v1  ;;  %1867 = vmatprep.subr.bf16.mxu1 %v2233_v1  ;;  %v465_v4 = vld [vmem:[#allocation3 + $0x88] sm:$0xff]  ;;  %v447_v5 = vld [vmem:[#allocation3] sm:$0xff]  ;;  %v466_v8 = vld [vmem:[#allocation3 + $0x90] sm:$0xff]  ;;  %p427_p7 = scmp.lt.s32.totalorder %s2215_s20, 1  ;;  %s1438_s27 = sshll.u32 %s2211_s19, 4  ;;  %vm483_vm1 = vcmask 1046528  }
  0x4c   : > { %1612 = vmatprep.mubr.msk.f32.mxu0 %vm2234_vm0, %v2235_v2  ;;  %1653 = vmatprep.mubr.msk.f32.mxu1 %vm2234_vm0, %v2235_v2  ;;  %v1844_v6 = vpack.c.bf16 %v465_v4, %v464_v3  ;;  %v448_v7 = vld [vmem:[#allocation3 + $0x8] sm:$0xff]  ;;  %v467_v9 = vld [vmem:[#allocation3 + $0x98] sm:$0xff]  ;;  %v449_v11 = vld [vmem:[#allocation3 + $0x10] sm:$0xff]  ;;  %vm669_vm2 = vcmask 1045504   ;;  %vm780_vm3 = vcmask 1041408   ;;  %s1442_s14 = sadd.s32 4294967295, %s1438_s27 }
  0x4d   : > { %v1868_v10 = vpack.c.bf16 %v448_v7, %v447_v5  ;;  %v450_v12 = vld [vmem:[#allocation3 + $0x18] sm:$0xff]  ;;  %v1847_v13 = vpack.c.bf16 %v467_v9, %v466_v8  ;;  %v468_v15 = vld [vmem:[#allocation3 + $0xa0] sm:$0xff]  ;;  %v469_v16 = vld [vmem:[#allocation3 + $0xa8] sm:$0xff]  ;;  %s2672_s20 = smov (!%p427_p7, %s2215_s20), 1  ;;  %vm1315_vm13 = vcmask 7168  }
  0x4e   : > { %1845 = vmatpush3.bf16.msra.mxu0 %v1844_v6  ;;  %v1871_v14 = vpack.c.bf16 %v450_v12, %v449_v11  ;;  %v451_v17 = vld [vmem:[#allocation3 + $0x20] sm:$0xff]  ;;  %v452_v18 = vld [vmem:[#allocation3 + $0x28] sm:$0xff]  ;;  %v1850_v19 = vpack.c.bf16 %v469_v16, %v468_v15  ;;  %v470_v21 = vld [vmem:[#allocation3 + $0xb0] sm:$0xff]  ;;  %s2047_s21 = smul.u32 56, %s2672_s20 }
  0x4f   : > { %1869 = vmatpush3.bf16.msra.mxu1 %v1868_v10  ;;  %1846 = vmatprep.subr.bf16.mxu0 %v2233_v1  ;;  %v1874_v20 = vpack.c.bf16 %v452_v18, %v451_v17  ;;  %v471_v22 = vld [vmem:[#allocation3 + $0xb8] sm:$0xff]  ;;  %v453_v23 = vld [vmem:[#allocation3 + $0x30] sm:$0xff]  ;;  %v472_v27 = vld [vmem:[#allocation3 + $0xc0] sm:$0xff]  ;;  %s2048_s22 = smul.u32 6, %s2672_s20 }
  0x50   : > { %1870 = vmatprep.subr.bf16.mxu1 %v2233_v1  ;;  %v454_v24 = vld [vmem:[#allocation3 + $0x38] sm:$0xff]  ;;  %v1853_v25 = vpack.c.bf16 %v471_v22, %v470_v21  ;;  %v473_v28 = vld [vmem:[#allocation3 + $0xc8] sm:$0xff]  ;;  %v455_v29 = vld [vmem:[#allocation3 + $0x40] sm:$0xff]  ;;  %s431_s26 = scalar_lea.vmem %s2631_s0, %s2047_s21  ;;  %s1436_s21 = sshll.u32 %s2211_s19, 1 }
  0x51   : > { %v1877_v26 = vpack.c.bf16 %v454_v24, %v453_v23  ;;  %v456_v30 = vld [vmem:[#allocation3 + $0x48] sm:$0xff]  ;;  %v1856_v31 = vpack.c.bf16 %v473_v28, %v472_v27  ;;  %v474_v33 = vld [vmem:[#allocation3 + $0xd0] sm:$0xff]  ;;  %v475_v34 = vld [vmem:[#allocation3 + $0xd8] sm:$0xff]  ;;  %s443_s30 = scalar_lea.vmem %s431_s26, %s1438_s27  ;;  %p435_p9 = scmp.lt.s32.totalorder %s1436_s21, 5 }
  0x52   : > { %1848 = vmatpush3.bf16.msra.mxu0 %v1847_v13  ;;  %v1880_v32 = vpack.c.bf16 %v456_v30, %v455_v29  ;;  %v457_v35 = vld [vmem:[#allocation3 + $0x50] sm:$0xff]  ;;  %v458_v36 = vld [vmem:[#allocation3 + $0x58] sm:$0xff]  ;;  %v1859_v37 = vpack.c.bf16 %v475_v34, %v474_v33  ;;  %v476_v39 = vld [vmem:[#allocation3 + $0xe0] sm:$0xff] }
  0x53   : > { %1872 = vmatpush3.bf16.msra.mxu1 %v1871_v14  ;;  %1849 = vmatprep.subr.bf16.mxu0 %v2233_v1  ;;  %v1883_v38 = vpack.c.bf16 %v458_v36, %v457_v35  ;;  %v477_v40 = vld [vmem:[#allocation3 + $0xe8] sm:$0xff]  ;;  %v459_v41 = vld [vmem:[#allocation3 + $0x60] sm:$0xff]  ;;  %v478_v44 = vld [vmem:[#allocation3 + $0xf0] sm:$0xff]  ;;  %s2674_s21 = smov (!%p435_p9, %s1436_s21), 5 }
  0x54   : > { %1873 = vmatprep.subr.bf16.mxu1 %v2233_v1  ;;  %v460_v42 = vld [vmem:[#allocation3 + $0x68] sm:$0xff]  ;;  %v1862_v43 = vpack.c.bf16 %v477_v40, %v476_v39  ;;  %v479_v46 = vld [vmem:[#allocation3 + $0xf8] sm:$0xff]  ;;  %v461_v49 = vld [vmem:[#allocation3 + $0x70] sm:$0xff]  ;;  %s438_s25 = sadd.s32 %s2048_s22, %s2674_s21 }
  0x55   : > { %v1886_v45 = vpack.c.bf16 %v460_v42, %v459_v41  ;;  %v2430_v47 = vld [vmem:[%s443_s30] sm:$0xff]  ;;  %v2432_v48 = vld [vmem:[%s443_s30 + $0x8] sm:$0xff]  ;;  %v1865_v51 = vpack.c.bf16 %v479_v46, %v478_v44  ;;  %v2438_v57 = vld [vmem:[%s443_s30 + $0x10] sm:$0xff]  ;;  %s1437_s26 = sshll.u32 %s438_s25, 3 }
  0x56   : > { %1851 = vmatpush3.bf16.msra.mxu0 %v1850_v19  ;;  %v462_v50 = vld [vmem:[#allocation3 + $0x78] sm:$0xff]  ;;  %v484_v52 = vrot.slane %v2430_v47, 1  ;;  %v485_v53 = vrot.slane %v2432_v48, 1  ;;  %v653_v55 = vld [vmem:[#allocation3 + $0x100] sm:$0xff]  ;;  %v654_v56 = vld [vmem:[#allocation3 + $0x108] sm:$0xff]  ;;  %v487_v60 = vrot.slane %v2438_v57, 1  ;;  %s440_s28 = scalar_lea.vmem %s2642_s11, %s1437_s26 }
  0x57   : > { %1875 = vmatpush3.bf16.msra.mxu1 %v1874_v20  ;;  %1852 = vmatprep.subr.bf16.mxu0 %v2233_v1  ;;  %v1889_v54 = vpack.c.bf16 %v462_v50, %v461_v49  ;;  %v1892_v59 = vpack.c.bf16 %v654_v56, %v653_v55  ;;  %v655_v61 = vld [vmem:[#allocation3 + $0x110] sm:$0xff]  ;;  %v656_v62 = vld [vmem:[#allocation3 + $0x118] sm:$0xff]  ;;  %v657_v3 = vld [vmem:[#allocation3 + $0x120] sm:$0xff]  ;;  %v670_v21 = vrot.slane %v2430_v47, 2  ;;  %v671_v22 = vrot.slane %v2432_v48, 2 }
  0x58   : > { %1876 = vmatprep.subr.bf16.mxu1 %v2233_v1  ;;  %v486_v58 = vsel %vm483_vm1, %v484_v52, %v485_v53  ;;  %v1895_v63 = vpack.c.bf16 %v656_v62, %v655_v61  ;;  %v488_v0 = vsel %vm483_vm1, %v485_v53, %v487_v60  ;;  %v658_v4 = vld [vmem:[#allocation3 + $0x128] sm:$0xff]  ;;  %v659_v6 = vld [vmem:[#allocation3 + $0x130] sm:$0xff]  ;;  %v660_v7 = vld [vmem:[#allocation3 + $0x138] sm:$0xff]  ;;  %v673_v24 = vrot.slane %v2438_v57, 2 }
  0x59   : > { %v1898_v5 = vpack.c.bf16 %v658_v4, %v657_v3  ;;  %v1901_v8 = vpack.c.bf16 %v660_v7, %v659_v6  ;;  %v661_v9 = vld [vmem:[#allocation3 + $0x140] sm:$0xff]  ;;  %v662_v10 = vld [vmem:[#allocation3 + $0x148] sm:$0xff]  ;;  %v663_v12 = vld [vmem:[#allocation3 + $0x150] sm:$0xff]  ;;  %v672_v23 = vsel %vm669_vm2, %v670_v21, %v671_v22 }
  0x5a   : > { %1854 = vmatpush3.bf16.msra.mxu0 %v1853_v25  ;;  %v1904_v11 = vpack.c.bf16 %v662_v10, %v661_v9  ;;  %v664_v13 = vld [vmem:[#allocation3 + $0x158] sm:$0xff]  ;;  %v665_v15 = vld [vmem:[#allocation3 + $0x160] sm:$0xff]  ;;  %v666_v16 = vld [vmem:[#allocation3 + $0x168] sm:$0xff]  ;;  %v674_v25 = vsel %vm669_vm2, %v671_v22, %v673_v24 }
  0x5b   : > { %1878 = vmatpush3.bf16.msra.mxu1 %v1877_v26  ;;  %1855 = vmatprep.subr.bf16.mxu0 %v2233_v1  ;;  %v1907_v14 = vpack.c.bf16 %v664_v13, %v663_v12  ;;  %v1910_v17 = vpack.c.bf16 %v666_v16, %v665_v15  ;;  %v667_v18 = vld [vmem:[#allocation3 + $0x170] sm:$0xff]  ;;  %v668_v19 = vld [vmem:[#allocation3 + $0x178] sm:$0xff]  ;;  %v884_v61 = vld [vmem:[#allocation5 + $0x88] sm:$0xff] }
  0x5c   : > { %1879 = vmatprep.subr.bf16.mxu1 %v2233_v1  ;;  %v1913_v20 = vpack.c.bf16 %v668_v19, %v667_v18  ;;  %v887_v4 = vld [vmem:[#allocation5 + $0xa0] sm:$0xff]  ;;  %v889_v7 = vld [vmem:[#allocation5 + $0xb0] sm:$0xff] }
  0x5d   : > { %v891_v10 = vld [vmem:[#allocation5 + $0xc0] sm:$0xff]  ;;  %v893_v13 = vld [vmem:[#allocation5 + $0xd0] sm:$0xff] }
  0x5e   : > { %1857 = vmatpush3.bf16.msra.mxu0 %v1856_v31  ;;  %v895_v16 = vld [vmem:[#allocation5 + $0xe0] sm:$0xff]  ;;  %v897_v19 = vld [vmem:[#allocation5 + $0xf0] sm:$0xff] }
  0x5f   : > { %1881 = vmatpush3.bf16.msra.mxu1 %v1880_v32  ;;  %1858 = vmatprep.subr.bf16.mxu0 %v2233_v1  ;;  %v866_v22 = vld [vmem:[#allocation5] sm:$0xff] }
  0x60   : > { %1882 = vmatprep.subr.bf16.mxu1 %v2233_v1 }
  0x62   : > { %1860 = vmatpush3.bf16.msra.mxu0 %v1859_v37 }
  0x63   : > { %1884 = vmatpush3.bf16.msra.mxu1 %v1883_v38  ;;  %1861 = vmatprep.subr.bf16.mxu0 %v2233_v1 }
  0x64   : > { %1885 = vmatprep.subr.bf16.mxu1 %v2233_v1 }
  0x66   : > { %1863 = vmatpush3.bf16.msra.mxu0 %v1862_v43 }
  0x67   : > { %1887 = vmatpush3.bf16.msra.mxu1 %v1886_v45  ;;  %1864 = vmatprep.subr.bf16.mxu0 %v2233_v1 }
  0x68   : > { %1888 = vmatprep.subr.bf16.mxu1 %v2233_v1 }
  0x6a   : > { %1866 = vmatpush3.bf16.msra.mxu0 %v1865_v51 }
  0x6b   : > { %1890 = vmatpush3.bf16.msra.mxu1 %v1889_v54  ;;  %1891 = vmatprep.subr.bf16.mxu0 %v2233_v1 }
  0x6d   : > { %1613 = vmatmul.mubr.f32.vlgmr.msra.gmra.mrb[0].mxu0 %v486_v58 }
  0x6e   : > { %1654 = vmatmul.mubr.f32.vlgmr.msra.gmra.mrb[0].mxu1 %v2430_v47  ;;  %1893 = vmatpush3.bf16.msra.mxu0 %v1892_v59 }
  0x6f   : > { %1894 = vmatprep.subr.bf16.mxu0 %v2233_v1  ;;  %1615 = vmatprep.mubr.msk.f32.mxu0 %vm2234_vm0, %v2235_v2 }
  0x70   : > { %1656 = vmatprep.mubr.msk.f32.mxu1 %vm2234_vm0, %v2235_v2 }
  0x71   : > { %1616 = vmatmul.mubr.f32.gmra.mrb[2].mxu0 %v488_v0  ;;  %v886_v0 = vld [vmem:[#allocation5 + $0x98] sm:$0xff] }
  0x72   : > { %1896 = vmatpush3.bf16.msra.mxu0 %v1895_v63  ;;  %1657 = vmatmul.mubr.f32.gmra.mrb[2].mxu1 %v2432_v48  ;;  %v885_v63 = vld [vmem:[#allocation5 + $0x90] sm:$0xff] }
  0x73   : > { %1897 = vmatprep.subr.bf16.mxu0 %v2233_v1  ;;  %1618 = vmatprep.mubr.msk.f32.mxu0 %vm2234_vm0, %v2235_v2  ;;  %v1919_v3 = vpack.c.bf16 %v886_v0, %v885_v63 }
  0x74   : > { %1659 = vmatprep.mubr.msk.f32.mxu1 %vm2234_vm0, %v2235_v2 }
  0x75   : > { %1619 = vmatmul.mubr.f32.gmra.mrb[4].mxu0 %v487_v60  ;;  %v883_v60 = vld [vmem:[#allocation5 + $0x80] sm:$0xff] }
  0x76   : > { %1899 = vmatpush3.bf16.msra.mxu0 %v1898_v5  ;;  %1660 = vmatmul.mubr.f32.gmra.mrb[4].mxu1 %v2438_v57  ;;  %v1915_v62 = vpack.c.bf16 %v884_v61, %v883_v60  ;;  %v888_v5 = vld [vmem:[#allocation5 + $0xa8] sm:$0xff]  ;;  %v1441_v61 = vld [vmem:[%s2635_s4] ss:$0 sm:$0xff] }
  0x77   : > { %1900 = vmatprep.subr.bf16.mxu0 %v2233_v1  ;;  %1694 = vmatprep.mubr.msk.f32.mxu0 %vm2234_vm0, %v2235_v2  ;;  %v1923_v6 = vpack.c.bf16 %v888_v5, %v887_v4 }
  0x78   : > { %1916 = vmatprep.subr.bf16.mxu1 %v1915_v62 }
  0x79   : > { %1918 = vmatpush3.bf16.msra.mxu1 %v1915_v62 }
  0x7a   : > { %1902 = vmatpush3.bf16.msra.mxu0 %v1901_v8  ;;  %1920 = vmatprep.subr.bf16.mxu1 %v1919_v3  ;;  %v890_v8 = vld [vmem:[#allocation5 + $0xb8] sm:$0xff] }
  0x7b   : > { %1903 = vmatprep.subr.bf16.mxu0 %v2233_v1  ;;  %v1927_v9 = vpack.c.bf16 %v890_v8, %v889_v7  ;;  %v1217_v8 = vld [vmem:[%s2640_s9] sm:$0xff] }
  0x7d   : > { %1922 = vmatpush3.bf16.msra.mxu1 %v1919_v3 }
  0x7e   : > { %1905 = vmatpush3.bf16.msra.mxu0 %v1904_v11  ;;  %1924 = vmatprep.subr.bf16.mxu1 %v1923_v6  ;;  %v892_v11 = vld [vmem:[#allocation5 + $0xc8] sm:$0xff] }
  0x7f   : > { %1906 = vmatprep.subr.bf16.mxu0 %v2233_v1  ;;  %v1931_v12 = vpack.c.bf16 %v892_v11, %v891_v10 }
  0x81   : > { %1926 = vmatpush3.bf16.msra.mxu1 %v1923_v6 }
  0x82   : > { %1908 = vmatpush3.bf16.msra.mxu0 %v1907_v14  ;;  %1928 = vmatprep.subr.bf16.mxu1 %v1927_v9  ;;  %v894_v14 = vld [vmem:[#allocation5 + $0xd8] sm:$0xff] }
  0x83   : > { %1909 = vmatprep.subr.bf16.mxu0 %v2233_v1  ;;  %v1935_v15 = vpack.c.bf16 %v894_v14, %v893_v13 }
  0x85   : > { %1930 = vmatpush3.bf16.msra.mxu1 %v1927_v9 }
  0x86   : > { %1911 = vmatpush3.bf16.msra.mxu0 %v1910_v17  ;;  %1932 = vmatprep.subr.bf16.mxu1 %v1931_v12  ;;  %v896_v17 = vld [vmem:[#allocation5 + $0xe8] sm:$0xff] }
  0x87   : > { %1912 = vmatprep.subr.bf16.mxu0 %v2233_v1  ;;  %v1939_v18 = vpack.c.bf16 %v896_v17, %v895_v16  ;;  %v868_v17 = vld [vmem:[#allocation5 + $0x10] sm:$0xff] }
  0x89   : > { %1934 = vmatpush3.bf16.msra.mxu1 %v1931_v12 }
  0x8a   : > { %1914 = vmatpush3.bf16.msra.mxu0 %v1913_v20  ;;  %1936 = vmatprep.subr.bf16.mxu1 %v1935_v15  ;;  %v898_v20 = vld [vmem:[#allocation5 + $0xf8] sm:$0xff] }
  0x8b   : > { %v1943_v21 = vpack.c.bf16 %v898_v20, %v897_v19 }
  0x8d   : > { %1695 = vmatmul.mubr.f32.vlgmr.msra.gmra.mrb[6].mxu0 %v672_v23  ;;  %1938 = vmatpush3.bf16.msra.mxu1 %v1935_v15  ;;  %v867_v23 = vld [vmem:[#allocation5 + $0x8] sm:$0xff] }
  0x8e   : > { %1697 = vmatprep.mubr.msk.f32.mxu0 %vm2234_vm0, %v2235_v2  ;;  %1940 = vmatprep.subr.bf16.mxu1 %v1939_v18 }
  0x91   : > { %1698 = vmatmul.mubr.f32.gmra.mrb[8].mxu0 %v674_v25  ;;  %1942 = vmatpush3.bf16.msra.mxu1 %v1939_v18  ;;  %v869_v18 = vld [vmem:[#allocation5 + $0x18] sm:$0xff] }
  0x92   : > { %1700 = vmatprep.mubr.msk.f32.mxu0 %vm2234_vm0, %v2235_v2  ;;  %v1439_v2 = vld [vmem:[%s2633_s2] ss:$0 sm:$0xff]  ;;  %1944 = vmatprep.subr.bf16.mxu1 %v1943_v21 }
  0x95   : > { %1701 = vmatmul.mubr.f32.gmra.mrb[10].mxu0 %v673_v24  ;;  %1946 = vmatpush3.bf16.msra.mxu1 %v1943_v21  ;;  %v2492_v24 = vpack.c.bf16 %v867_v23, %v866_v22  ;;  %v1951_v23 = vpack.c.bf16 %v869_v18, %v868_v17  ;;  %v1219_v18 = vld [vmem:[%s2640_s9 + $0x10] sm:$0xff] }
  0x97   : > { %1948 = vmatprep.subr.bf16.mxu1 %v2492_v24 }
 0x140   : > { %v558_v26 = vpop.f32.mrb[0].mxu0 }
 0x141   : > { %v1614_v27 = vpop.f32.mrb[1].mxu0  ;;  %v638_v1 = vpop.f32.mrb[0].mxu1 }
 0x142   : > { %v639_v28 = vadd.f32 %v638_v1, %v558_v26  ;;  %v1655_v29 = vpop.f32.mrb[1].mxu1 }
 0x144   : > { %v563_v30 = vpop.f32.mrb[2].mxu0 }
 0x145   : > { %v1617_v31 = vpop.f32.mrb[3].mxu0  ;;  %v643_v32 = vpop.f32.mrb[2].mxu1 }
 0x146   : > { %v644_v33 = vadd.f32 %v643_v32, %v563_v30  ;;  %v1658_v34 = vpop.f32.mrb[3].mxu1 }
 0x148   : > { %v568_v35 = vpop.f32.mrb[4].mxu0 }
 0x149   : > { %v1620_v36 = vpop.f32.mrb[5].mxu0  ;;  %v648_v37 = vpop.f32.mrb[4].mxu1 }
 0x14a   : > { %v649_v38 = vadd.f32 %v648_v37, %v568_v35  ;;  %v1661_v39 = vpop.f32.mrb[5].mxu1 }
 0x160   : > { %v744_v40 = vpop.f32.mrb[6].mxu0 }
 0x161   : > { %v758_v41 = vadd.f32 %v744_v40, %v639_v28  ;;  %v1696_v42 = vpop.f32.mrb[7].mxu0 }
 0x163   : > { %v768_v43 = vadd.f32 %v1439_v2, %v758_v41 }
 0x164   : > { %v749_v44 = vpop.f32.mrb[8].mxu0 }
 0x165   : > { %v2477_v45 = vmax.f32 %v768_v43, 0.0  ;;  %v759_v46 = vadd.f32 %v749_v44, %v644_v33  ;;  %v1699_v47 = vpop.f32.mrb[9].mxu0  ;;  %v839_v43 = vlaneseq }
 0x167   : > { %v769_v48 = vadd.f32 %v1439_v2, %v759_v46  ;;  %776 = vadd.xlane.f32.xlu0 %v2477_v45  ;;  %v784_v49 = vmul.f32 %v2477_v45, %v2477_v45 }
 0x168   : > { %v754_v50 = vpop.f32.mrb[10].mxu0 }
 0x169   : > { %v2482_v51 = vmax.f32 %v769_v48, 0.0  ;;  %v760_v52 = vadd.f32 %v754_v50, %v649_v38  ;;  %787 = vadd.xlane.f32.xlu1 %v784_v49  ;;  %v1702_v53 = vpop.f32.mrb[11].mxu0  ;;  %v840_v48 = vshrl.u32 %v839_v43, 7  ;;  %v844_v49 = vstv %s1442_s14  ;;  %v1061_v43 = vld [vmem:[#allocation5 + $0x108] sm:$0xff] }
 0x16b   : > { %v770_v54 = vadd.f32 %v1439_v2, %v760_v52  ;;  %778 = vadd.xlane.f32.xlu0 %v2482_v51  ;;  %v785_v56 = vmul.f32 %v2482_v51, %v2482_v51  ;;  %v841_v53 = vadd.s32 8, %v840_v48  ;;  %v842_v62 = vadd.s32 16, %v840_v48 }
 0x16d   : > { %v2485_v55 = vmax.f32 %v770_v54, 0.0  ;;  %v846_v60 = vadd.s32 %v844_v49, %v841_v53  ;;  %v847_v5 = vadd.s32 %v844_v49, %v842_v62  ;;  %v1070_v62 = vld [vmem:[#allocation5 + $0x150] sm:$0xff] }
 0x16f   : > { %789 = vadd.xlane.f32.xlu0 %v785_v56  ;;  %v781_v57 = vsel %vm780_vm3, %v2485_v55, 0.0  ;;  %v786_v58 = vmul.f32 %v2485_v55, %v2485_v55  ;;  %v1440_v56 = vld [vmem:[%s2634_s3] ss:$0 sm:$0xff]  ;;  %vm849_vm6 = vcmp.ge.s32.totalorder %v846_v60, 0  ;;  %vm852_vm7 = vcmp.lt.s32.totalorder %v846_v60, 40  ;;  %v1069_v60 = vld [vmem:[#allocation5 + $0x148] sm:$0xff] }
 0x170   : > { %782 = vadd.xlane.f32.xlu1 %v781_v57  ;;  %vm2510_vm9 = vmand %vm849_vm6, %vm852_vm7  ;;  %vm850_vm10 = vcmp.ge.s32.totalorder %v847_v5, 0  ;;  %vm853_vm11 = vcmp.lt.s32.totalorder %v847_v5, 40  ;;  %v1074_v5 = vld [vmem:[#allocation5 + $0x170] sm:$0xff] }
 0x171   : > { %v791_v59 = vsel %vm780_vm3, %v786_v58, 0.0  ;;  %v845_v58 = vadd.s32 %v844_v49, %v840_v48  ;;  %vm856_vm12 = vmand %vm850_vm10, %vm853_vm11 }
 0x173   : > { %vm848_vm4 = vcmp.ge.s32.totalorder %v845_v58, 0  ;;  %vm851_vm5 = vcmp.lt.s32.totalorder %v845_v58, 40 }
 0x174   : > { %792 = vadd.xlane.f32.xlu1 %v791_v59  ;;  %vm2505_vm8 = vmand %vm848_vm4, %vm851_vm5 }
 0x1f4   : > { %v777_v25 = vpop.xlane.xlu0 %776 }
 0x1f5   : > { %v794_v26 = vmul.f32 0.0078125, %v777_v25 }
 0x1f6   : > { %v788_v27 = vpop.xlane.xlu1 %787 }
 0x1f7   : > { %v800_v1 = vmul.f32 %v794_v26, %v794_v26  ;;  %v797_v28 = vmul.f32 0.0078125, %v788_v27  ;;  %v809_v50 = vsub.f32 %v2477_v45, %v794_v26  ;;  %v870_v26 = vld [vmem:[#allocation5 + $0x20] sm:$0xff]  ;;  %v871_v27 = vld [vmem:[#allocation5 + $0x28] sm:$0xff] }
 0x1f8   : > { %v779_v29 = vpop.xlane.xlu0 %778 }
 0x1f9   : > { %v803_v30 = vsub.f32 %v797_v28, %v800_v1  ;;  %v795_v31 = vmul.f32 0.0078125, %v779_v29  ;;  %v1955_v28 = vpack.c.bf16 %v871_v27, %v870_v26  ;;  %v872_v29 = vld [vmem:[#allocation5 + $0x30] sm:$0xff] }
 0x1fa   : > { %v1224_v26 = vld [vmem:[%s2640_s9 + $0x38] sm:$0xff] }
 0x1fb   : > { %v806_v32 = vmax.f32 %v803_v30, 0.0  ;;  %v801_v35 = vmul.f32 %v795_v31, %v795_v31  ;;  %v810_v63 = vsub.f32 %v2482_v51, %v795_v31  ;;  %v873_v30 = vld [vmem:[#allocation5 + $0x38] sm:$0xff] }
 0x1fc   : > { %v790_v33 = vpop.xlane.xlu0 %789  ;;  %v1959_v31 = vpack.c.bf16 %v873_v30, %v872_v29  ;;  %v1227_v30 = vld [vmem:[%s2640_s9 + $0x50] sm:$0xff] }
 0x1fd   : > { %v812_v34 = vadd.f32 1e-05, %v806_v32  ;;  %v798_v36 = vmul.f32 0.0078125, %v790_v33  ;;  %v783_v37 = vpop.xlane.xlu1 %782  ;;  %v874_v32 = vld [vmem:[#allocation5 + $0x40] sm:$0xff]  ;;  %v875_v33 = vld [vmem:[#allocation5 + $0x48] sm:$0xff] }
 0x1fe   : > { %v796_v38 = vmul.f32 0.0078125, %v783_v37  ;;  %v878_v37 = vld [vmem:[#allocation5 + $0x60] sm:$0xff] }
 0x1ff   : > { %2115 = vrsqrt.f32 %v812_v34  ;;  %v804_v39 = vsub.f32 %v798_v36, %v801_v35  ;;  %v1963_v34 = vpack.c.bf16 %v875_v33, %v874_v32  ;;  %v876_v35 = vld [vmem:[#allocation5 + $0x50] sm:$0xff]  ;;  %v877_v36 = vld [vmem:[#allocation5 + $0x58] sm:$0xff] }
 0x200   : > { %v802_v41 = vmul.f32 %v796_v38, %v796_v38  ;;  %v811_v7 = vsub.f32 %v2485_v55, %v796_v38  ;;  %v879_v38 = vld [vmem:[#allocation5 + $0x68] sm:$0xff]  ;;  %v1229_v33 = vld [vmem:[%s2640_s9 + $0x60] sm:$0xff] }
 0x201   : > { %v807_v40 = vmax.f32 %v804_v39, 0.0  ;;  %v793_v2 = vpop.xlane.xlu1 %792  ;;  %v1971_v39 = vpack.c.bf16 %v879_v38, %v878_v37 }
 0x202   : > { %v799_v42 = vmul.f32 0.0078125, %v793_v2  ;;  %v881_v2 = vld [vmem:[#allocation5 + $0x78] sm:$0xff] }
 0x203   : > { %v813_v44 = vadd.f32 1e-05, %v807_v40  ;;  %v880_v40 = vld [vmem:[#allocation5 + $0x70] sm:$0xff] }
 0x204   : > { %v805_v46 = vsub.f32 %v799_v42, %v802_v41  ;;  %v1975_v41 = vpack.c.bf16 %v881_v2, %v880_v40  ;;  %v1060_v42 = vld [vmem:[#allocation5 + $0x100] sm:$0xff] }
 0x205   : > { %2117 = vrsqrt.f32 %v813_v44  ;;  %v1979_v44 = vpack.c.bf16 %v1061_v43, %v1060_v42 }
 0x206   : > { %v808_v47 = vmax.f32 %v805_v46, 0.0  ;;  %v1062_v46 = vld [vmem:[#allocation5 + $0x110] sm:$0xff] }
 0x208   : > { %v814_v52 = vadd.f32 1e-05, %v808_v47  ;;  %v1063_v47 = vld [vmem:[#allocation5 + $0x118] sm:$0xff] }
 0x209   : > { %v2116_v54 = vpop.eup %2115  ;;  %v1983_v49 = vpack.c.bf16 %v1063_v47, %v1062_v46 }
 0x20a   : > { %2119 = vrsqrt.f32 %v814_v52  ;;  %v818_v57 = vmul.f32 %v2116_v54, %v809_v50  ;;  %v1064_v50 = vld [vmem:[#allocation5 + $0x120] sm:$0xff]  ;;  %v1065_v52 = vld [vmem:[#allocation5 + $0x128] sm:$0xff] }
 0x20b   : > { %v1987_v54 = vpack.c.bf16 %v1065_v52, %v1064_v50 }
 0x20c   : > { %v827_v59 = vmul.f32 %v1440_v56, %v818_v57  ;;  %v1067_v57 = vld [vmem:[#allocation5 + $0x138] sm:$0xff] }
 0x20e   : > { %v836_v3 = vadd.f32 %v1441_v61, %v827_v59  ;;  %v1068_v59 = vld [vmem:[#allocation5 + $0x140] sm:$0xff] }
 0x20f   : > { %v2118_v45 = vpop.eup %2117 }
 0x210   : > { %v819_v0 = vmul.f32 %v2118_v45, %v810_v63  ;;  %v2518_v10 = vsel %vm2505_vm8, %v836_v3, 0.0  ;;  %v1071_v63 = vld [vmem:[#allocation5 + $0x158] sm:$0xff] }
 0x211   : > { %v902_v55 = vrot.slane %v2518_v10, 1  ;;  %v1076_v48 = vrot.slane %v2518_v10, 2  ;;  %v1999_v45 = vpack.c.bf16 %v1071_v63, %v1070_v62  ;;  %v1445_v10 = vld [vmem:[%s2637_s6] ss:$0 sm:$0xff] }
 0x212   : > { %v828_v6 = vmul.f32 %v1440_v56, %v819_v0  ;;  %v1072_v0 = vld [vmem:[#allocation5 + $0x160] sm:$0xff]  ;;  %v1447_v63 = vld [vmem:[%s2639_s8] ss:$0 sm:$0xff] }
 0x214   : > { %v2120_v51 = vpop.eup %2119  ;;  %v2514_v9 = vadd.f32 %v1441_v61, %v828_v6  ;;  %v1075_v6 = vld [vmem:[#allocation5 + $0x178] sm:$0xff] }
 0x215   : > { %v820_v11 = vmul.f32 %v2120_v51, %v811_v7  ;;  %v2007_v7 = vpack.c.bf16 %v1075_v6, %v1074_v5  ;;  %v1218_v51 = vld [vmem:[%s2640_s9 + $0x8] sm:$0xff]  ;;  %v1448_v5 = vld [vmem:[#allocation2] ss:$0 sm:$0xff] }
 0x216   : > { %v2523_v12 = vsel %vm2510_vm9, %v2514_v9, 0.0 }
 0x217   : > { %v903_v13 = vrot.slane %v2523_v12, 1  ;;  %v829_v14 = vmul.f32 %v1440_v56, %v820_v11  ;;  %v1077_v21 = vrot.slane %v2523_v12, 2  ;;  %v1066_v56 = vld [vmem:[#allocation5 + $0x130] sm:$0xff] }
 0x218   : > { %v1991_v58 = vpack.c.bf16 %v1067_v57, %v1066_v56 }
 0x219   : > { %v904_v15 = vsel %vm483_vm1, %v902_v55, %v903_v13  ;;  %v838_v16 = vadd.f32 %v1441_v61, %v829_v14  ;;  %v1078_v53 = vsel %vm669_vm2, %v1076_v48, %v1077_v21  ;;  %v1995_v61 = vpack.c.bf16 %v1069_v60, %v1068_v59  ;;  %v1446_v59 = vld [vmem:[%s2638_s7] ss:$0 sm:$0xff] }
 0x21a   : > { %1735 = vmatprep.mubr.f32.mxu1 %v904_v15 }
 0x21b   : > { %v865_v19 = vsel %vm856_vm12, %v838_v16, 0.0 }
 0x21c   : > { %v905_v20 = vrot.slane %v865_v19, 1  ;;  %v1079_v22 = vrot.slane %v865_v19, 2  ;;  %v1220_v19 = vld [vmem:[%s2640_s9 + $0x18] sm:$0xff] }
 0x21e   : > { %v906_v25 = vsel %vm483_vm1, %v903_v13, %v905_v20  ;;  %v2531_v1 = vsel %vm669_vm2, %v1077_v21, %v1079_v22  ;;  %v2015_v20 = vpack.c.bf16 %v1220_v19, %v1219_v18  ;;  %v1221_v21 = vld [vmem:[%s2640_s9 + $0x20] sm:$0xff]  ;;  %v1222_v22 = vld [vmem:[%s2640_s9 + $0x28] sm:$0xff] }
 0x21f   : > { %1736 = vmatmul.mubr.f32.vlgmr.msra.gmra.mrb[6].mxu1 %v906_v25  ;;  %v1223_v25 = vld [vmem:[%s2640_s9 + $0x30] sm:$0xff] }
 0x220   : > { %1950 = vmatpush3.bf16.msra.mxu1 %v2492_v24  ;;  %1770 = vmatprep.mubr.msk.f32.mxu1 %vm2505_vm8, %v836_v3  ;;  %v1967_v24 = vpack.c.bf16 %v877_v36, %v876_v35  ;;  %v1073_v3 = vld [vmem:[#allocation5 + $0x168] sm:$0xff]  ;;  %v2023_v27 = vpack.c.bf16 %v1224_v26, %v1223_v25 }
 0x221   : > { %1952 = vmatprep.subr.bf16.mxu1 %v1951_v23  ;;  %v2003_v4 = vpack.c.bf16 %v1073_v3, %v1072_v0  ;;  %v1231_v36 = vld [vmem:[%s2640_s9 + $0x70] sm:$0xff] }
 0x224   : > { %1954 = vmatpush3.bf16.msra.mxu1 %v1951_v23  ;;  %v2019_v23 = vpack.c.bf16 %v1222_v22, %v1221_v21 }
 0x225   : > { %1956 = vmatprep.subr.bf16.mxu1 %v1955_v28 }
 0x228   : > { %1958 = vmatpush3.bf16.msra.mxu1 %v1955_v28  ;;  %v1226_v28 = vld [vmem:[%s2640_s9 + $0x48] sm:$0xff] }
 0x229   : > { %1960 = vmatprep.subr.bf16.mxu1 %v1959_v31 }
 0x22c   : > { %1962 = vmatpush3.bf16.msra.mxu1 %v1959_v31  ;;  %v1228_v31 = vld [vmem:[%s2640_s9 + $0x58] sm:$0xff] }
 0x22d   : > { %1964 = vmatprep.subr.bf16.mxu1 %v1963_v34  ;;  %v2031_v32 = vpack.c.bf16 %v1228_v31, %v1227_v30 }
 0x230   : > { %1966 = vmatpush3.bf16.msra.mxu1 %v1963_v34  ;;  %v1230_v34 = vld [vmem:[%s2640_s9 + $0x68] sm:$0xff] }
 0x231   : > { %1968 = vmatprep.subr.bf16.mxu1 %v1967_v24  ;;  %v2035_v35 = vpack.c.bf16 %v1230_v34, %v1229_v33 }
 0x234   : > { %1970 = vmatpush3.bf16.msra.mxu1 %v1967_v24  ;;  %v1232_v24 = vld [vmem:[%s2640_s9 + $0x78] sm:$0xff] }
 0x235   : > { %1972 = vmatprep.subr.bf16.mxu1 %v1971_v39  ;;  %v2039_v37 = vpack.c.bf16 %v1232_v24, %v1231_v36 }
 0x238   : > { %1974 = vmatpush3.bf16.msra.mxu1 %v1971_v39 }
 0x239   : > { %1976 = vmatprep.subr.bf16.mxu1 %v1975_v41 }
 0x23c   : > { %1978 = vmatpush3.bf16.msra.mxu1 %v1975_v41 }
 0x23d   : > { %1980 = vmatprep.subr.bf16.mxu1 %v1979_v44 }
 0x23f   : > { %1771 = vmatmul.mubr.msk.f32.vlgmr.msra.gmra.mrb[6].mxu1 %vm2510_vm9, %v2514_v9  ;;  %v2011_v9 = vpack.c.bf16 %v1218_v51, %v1217_v8 }
 0x240   : > { %1982 = vmatpush3.bf16.msra.mxu1 %v1979_v44  ;;  %1805 = vmatprep.mubr.f32.mxu1 %v1078_v53 }
 0x241   : > { %1984 = vmatprep.subr.bf16.mxu1 %v1983_v49  ;;  %2012 = vmatprep.subr.bf16.mxu0 %v2011_v9 }
 0x242   : > { %2014 = vmatpush3.bf16.msra.mxu0 %v2011_v9 }
 0x243   : > { %2016 = vmatprep.subr.bf16.mxu0 %v2015_v20 }
 0x244   : > { %1986 = vmatpush3.bf16.msra.mxu1 %v1983_v49 }
 0x245   : > { %1988 = vmatprep.subr.bf16.mxu1 %v1987_v54 }
 0x246   : > { %2018 = vmatpush3.bf16.msra.mxu0 %v2015_v20 }
 0x247   : > { %2020 = vmatprep.subr.bf16.mxu0 %v2019_v23 }
 0x248   : > { %1990 = vmatpush3.bf16.msra.mxu1 %v1987_v54 }
 0x249   : > { %1992 = vmatprep.subr.bf16.mxu1 %v1991_v58 }
 0x24a   : > { %2022 = vmatpush3.bf16.msra.mxu0 %v2019_v23 }
 0x24b   : > { %2024 = vmatprep.subr.bf16.mxu0 %v2023_v27 }
 0x24c   : > { %1994 = vmatpush3.bf16.msra.mxu1 %v1991_v58 }
 0x24d   : > { %1996 = vmatprep.subr.bf16.mxu1 %v1995_v61 }
 0x24e   : > { %2026 = vmatpush3.bf16.msra.mxu0 %v2023_v27 }
 0x250   : > { %1998 = vmatpush3.bf16.msra.mxu1 %v1995_v61 }
 0x251   : > { %2000 = vmatprep.subr.bf16.mxu1 %v1999_v45 }
 0x254   : > { %2002 = vmatpush3.bf16.msra.mxu1 %v1999_v45 }
 0x255   : > { %2004 = vmatprep.subr.bf16.mxu1 %v2003_v4 }
 0x258   : > { %2006 = vmatpush3.bf16.msra.mxu1 %v2003_v4 }
 0x259   : > { %2008 = vmatprep.subr.bf16.mxu1 %v2007_v7 }
 0x25c   : > { %2010 = vmatpush3.bf16.msra.mxu1 %v2007_v7 }
 0x25f   : > { %1806 = vmatmul.mubr.f32.vlgmr.msra.gmra.mrb[6].mxu1 %v2531_v1  ;;  %v1225_v1 = vld [vmem:[%s2640_s9 + $0x40] sm:$0xff] }
 0x260   : > { %v2027_v29 = vpack.c.bf16 %v1226_v28, %v1225_v1 }
 0x262   : > { %2028 = vmatprep.subr.bf16.mxu0 %v2027_v29 }
 0x263   : > { %2030 = vmatpush3.bf16.msra.mxu0 %v2027_v29 }
 0x264   : > { %2032 = vmatprep.subr.bf16.mxu0 %v2031_v32 }
 0x267   : > { %2034 = vmatpush3.bf16.msra.mxu0 %v2031_v32 }
 0x268   : > { %2036 = vmatprep.subr.bf16.mxu0 %v2035_v35 }
 0x26b   : > { %2038 = vmatpush3.bf16.msra.mxu0 %v2035_v35 }
 0x26c   : > { %2040 = vmatprep.subr.bf16.mxu0 %v2039_v37 }
 0x26f   : > { %2042 = vmatpush3.bf16.msra.mxu0 %v2039_v37 }
 0x332   : > { %v1807_v11 = vpop.f32.mrb[6].mxu1 }
 0x333   : > { %v1168_v12 = vadd.f32 %v1807_v11, %v1445_v10  ;;  %v1149_v55 = vpop.f32.mrb[7].mxu1 }
 0x334   : > { %v1167_v13 = vadd.f32 %v1445_v10, %v1149_v55 }
 0x335   : > { %v2551_v14 = vmax.f32 %v1168_v12, 0.0 }
 0x336   : > { %v2553_v15 = vmax.f32 %v1167_v13, 0.0 }
 0x337   : > { %1175 = vadd.xlane.f32.xlu1 %v2551_v14  ;;  %v1178_v16 = vmul.f32 %v2551_v14, %v2551_v14 }
 0x338   : > { %1173 = vadd.xlane.f32.xlu0 %v2553_v15  ;;  %v1177_v17 = vmul.f32 %v2553_v15, %v2553_v15 }
 0x33b   : > { %1181 = vadd.xlane.f32.xlu1 %v1178_v16 }
 0x33c   : > { %1179 = vadd.xlane.f32.xlu0 %v1177_v17 }
 0x3c4   : > { %v1176_v38 = vpop.xlane.xlu1 %1175 }
 0x3c5   : > { %v1184_v39 = vmul.f32 0.0078125, %v1176_v38  ;;  %v1174_v40 = vpop.xlane.xlu0 %1173 }
 0x3c6   : > { %v1183_v2 = vmul.f32 0.0078125, %v1174_v40 }
 0x3c7   : > { %v1188_v42 = vmul.f32 %v1184_v39, %v1184_v39  ;;  %v1194_v56 = vsub.f32 %v2551_v14, %v1184_v39 }
 0x3c8   : > { %v1182_v41 = vpop.xlane.xlu1 %1181  ;;  %v1187_v46 = vmul.f32 %v1183_v2, %v1183_v2  ;;  %v1193_v58 = vsub.f32 %v2553_v15, %v1183_v2 }
 0x3c9   : > { %v1186_v43 = vmul.f32 0.0078125, %v1182_v41  ;;  %v1180_v44 = vpop.xlane.xlu0 %1179 }
 0x3ca   : > { %v1185_v47 = vmul.f32 0.0078125, %v1180_v44 }
 0x3cb   : > { %v1190_v48 = vsub.f32 %v1186_v43, %v1188_v42 }
 0x3cc   : > { %v1189_v49 = vsub.f32 %v1185_v47, %v1187_v46 }
 0x3cd   : > { %v1192_v50 = vmax.f32 %v1190_v48, 0.0 }
 0x3ce   : > { %v1191_v52 = vmax.f32 %v1189_v49, 0.0 }
 0x3cf   : > { %v1196_v53 = vadd.f32 1e-05, %v1192_v50 }
 0x3d0   : > { %v1195_v54 = vadd.f32 1e-05, %v1191_v52 }
 0x3d1   : > { %2121 = vrsqrt.f32 %v1196_v53 }
 0x3d2   : > { %2123 = vrsqrt.f32 %v1195_v54 }
 0x3db   : > { %v2122_v57 = vpop.eup %2121 }
 0x3dc   : > { %v2124_v60 = vpop.eup %2123  ;;  %v1200_v61 = vmul.f32 %v2122_v57, %v1194_v56 }
 0x3dd   : > { %v1199_v62 = vmul.f32 %v2124_v60, %v1193_v58 }
 0x3de   : > { %v1208_v45 = vmul.f32 %v1446_v59, %v1200_v61 }
 0x3df   : > { %v1207_v0 = vmul.f32 %v1446_v59, %v1199_v62 }
 0x3e0   : > { %v1216_v4 = vadd.f32 %v1447_v63, %v1208_v45 }
 0x3e1   : > { %v1215_v3 = vadd.f32 %v1447_v63, %v1207_v0 }
 0x3e3   : > { %1840 = vmatprep.mubr.f32.mxu0 %v1215_v3 }
 0x3e4   : > { %1841 = vmatmul.mubr.f32.vlgmr.msra.gmra.mrb[12].mxu0 %v1216_v4 }
 0x4b7   : > { %v1842_v6 = vpop.f32.mrb[12].mxu0 }
 0x4b8   : > { %v1312_v7 = vadd.f32 %v1842_v6, %v1448_v5  ;;  %v1306_v8 = vpop.f32.mrb[13].mxu0 }
 0x4b9   : > { %v1307_v51 = vadd.f32 %v1448_v5, %v1306_v8 }
 0x4ba   : > { %1317 = vst.msk [vmem:[%s440_s28 + $0x8] sm:$0xff] %vm1315_vm13, %v1312_v7 }
 0x4bb   : > { %1316 = vst.msk [vmem:[%s440_s28] sm:$0xff] %vm1315_vm13, %v1307_v51 }
 0x4bc PF: > { %s25_s23 = sadd.s32 1, %s2227_s23   ;;  %s2661_s19 = sld [smem:[#allocation9_spill]] }
 0x4bd   : > { %p22_p8 = scmp.ge.s32.totalorder %s25_s23, 8   ;;  %s2662_s20 = sld [smem:[#allocation10_spill]] }
 0x4be   : > { %s2663_s21 = sld [smem:[#allocation11_spill]]  ;;  %s2664_s22 = sld [smem:[#allocation12_spill]] }
 0x4bf   :  { %24 = sbr.rel (!%p22_p8) target bundleno = 7 (0x7), region = 108 }
 0x4c6   :  { %1348 = vsyncpa [#allocation4], 1 }
 0x4c7   :  { %1350 = vsyncpa [#allocation4 + $0x1], 1 }
 0x4c8   :  { %1351 = vsyncpa [#allocation6], 1 }

</bundles_post_ra>
